<compile_context>
chip_gen: v5e
topology: v5e:2x2
jax: 0.10.0
libtpu: 0.0.40
codegen_flags: <defaults>
</compile_context>

<pallas_src>
from functools import partial

import jax
import jax.numpy as jnp
from jax.experimental import pallas as pl
from jax.experimental.pallas import tpu as pltpu


def _round_up(x, m):
    return (x + m - 1) // m * m


def _lambertian_kernel(col_ref, lamb_ref, w_ref, out_ref, *, ambient):
    # col_ref: (3, tR, Sp)   lamb_ref / w_ref: (tR, Sp)   out_ref: (4, tR)
    w = w_ref[...]
    # Fold shading into the per-sample weight: one FMA + one mul on a (tR, Sp)
    # tile instead of scaling all 3 colour channels.
    ws = w * (ambient + (1.0 - ambient) * lamb_ref[...])          # (tR, Sp)
    comp = jnp.sum(col_ref[...] * ws[None, :, :], axis=-1)        # (3, tR)
    aw = jnp.sum(w[None, :, :], axis=-1)                          # (1, tR)
    out_ref[...] = jnp.concatenate([comp, aw], axis=0).astype(out_ref.dtype)


def lambertian_render(colors, lambertian, weights, background_color, *,
                      ambient, min_v, max_v, tile_r=None):
    """colors: (R, S, 3); lambertian: (R, S); weights: (R, S, 1) or (R, S).

    Returns the clipped composited rgb of shape (R, 3)."""
    R, S = lambertian.shape
    col = jnp.asarray(colors, jnp.float32)
    lamb = jnp.asarray(lambertian, jnp.float32)
    w2 = jnp.asarray(weights, jnp.float32).reshape(R, S)
    bg = jnp.asarray(background_color, jnp.float32).reshape(1, 3)

    # Lane-dense sample axis.
    S_pad = _round_up(S, 128)

    # Device-aware row-tile sizing (primary tuning knob).
    try:
        vmem_cap = int(pltpu.get_tpu_info().vmem_capacity_bytes)
    except Exception:
        vmem_cap = 64 * 1024 * 1024          # conservative: v7x per-TensorCore VMEM
    if tile_r is None:
        budget = int(0.35 * vmem_cap)        # for double-buffered f32 input tiles
        per_row = 2 * (3 + 1 + 1) * S_pad * 4  # colors(3) + lambertian + weights
        tile_r = max(128, min(2048, (budget // per_row) // 128 * 128))
    tile_r = _round_up(min(tile_r, _round_up(R, 128)), 128)
    R_pad = _round_up(R, tile_r)

    # Zero-pad: zero weights -> padded rows / samples contribute nothing.
    if R_pad != R or S_pad != S:
        pad_rs = ((0, R_pad - R), (0, S_pad - S))
        w2 = jnp.pad(w2, pad_rs)
        lamb = jnp.pad(lamb, pad_rs)
        col = jnp.pad(col, pad_rs + ((0, 0),))
    # Channel-major layout so each colour plane is lane-dense along S
    # (layout plumbing; ideally the producer emits channel-major directly).
    col_t = jnp.transpose(col, (2, 0, 1))    # (3, R_pad, S_pad)

    in_bytes = 2 * (3 + 1 + 1) * tile_r * S_pad * 4   # double-buffered inputs
    tmp_bytes = 6 * tile_r * S_pad * 4                # product / ws temporaries
    vmem_limit = min(int(0.9 * vmem_cap),
                     max(32 * 1024 * 1024, in_bytes + tmp_bytes + (2 << 20)))

    kernel = partial(_lambertian_kernel, ambient=float(ambient))
    packed = pl.pallas_call(
        kernel,
        out_shape=jax.ShapeDtypeStruct((4, R_pad), jnp.float32),
        grid_spec=pltpu.PrefetchScalarGridSpec(
            num_scalar_prefetch=0,
            grid=(R_pad // tile_r,),
            in_specs=[
                pl.BlockSpec((3, tile_r, S_pad), lambda i: (0, i, 0)),  # colors
                pl.BlockSpec((tile_r, S_pad), lambda i: (i, 0)),        # lambertian
                pl.BlockSpec((tile_r, S_pad), lambda i: (i, 0)),        # weights
            ],
            out_specs=pl.BlockSpec((4, tile_r), lambda i: (0, i)),
        ),
        compiler_params=pltpu.CompilerParams(
            dimension_semantics=("parallel",),
            vmem_limit_bytes=int(vmem_limit)),
    )(col_t, lamb, w2)

    comp_rgb = packed[:3, :R].T              # (R, 3)
    acc_w = packed[3:4, :R].T                # (R, 1)
    # PyTorch clamps conditionally (with a warning); unconditional clip is
    # numerically identical.
    return jnp.clip(comp_rgb + bg * (1.0 - acc_w), min_v, max_v)


def _reference(colors, lambertian, weights, background_color, *,
               ambient, min_v, max_v):
    shading = ambient + (1.0 - ambient) * lambertian               # (R, S)
    shaded = colors * shading[..., None]                           # (R, S, 3)
    comp_rgb = jnp.sum(weights * shaded, axis=-2)                  # (R, 3)
    acc_w = jnp.sum(weights, axis=-2)                              # (R, 1)
    out = comp_rgb + background_color * (1.0 - acc_w)
    return jnp.clip(out, min_v, max_v)


if __name__ == "__main__":
    key = jax.random.PRNGKey(0)
    k1, k2, k3 = jax.random.split(key, 3)

    R, S = 200, 48                      # rays x samples-per-ray (exercises padding)
    ambient, min_v, max_v = 0.1, 0.0, 1.0
    background_color = jnp.array([0.2, 0.3, 0.4], jnp.float32)     # Tensor background

    colors = jax.random.uniform(k1, (R, S, 3), jnp.float32)         # per-sample rgb
    lambertian = jax.random.uniform(k2, (R, S), jnp.float32)        # (R, S)
    w_raw = jax.random.uniform(k3, (R, S, 1), jnp.float32)
    weights = w_raw / (jnp.sum(w_raw, axis=-2, keepdims=True) + 0.5)  # (R, S, 1), sums < 1

    out = lambertian_render(colors, lambertian, weights, background_color,
                            ambient=ambient, min_v=min_v, max_v=max_v)
    out = jax.block_until_ready(out)

    ref = _reference(colors, lambertian, weights, background_color,
                     ambient=ambient, min_v=min_v, max_v=max_v)
    assert out.shape == (R, 3)
    assert jnp.allclose(out, ref, atol=1e-5, rtol=1e-5), "mismatch vs reference"

    print("KERNEL_OK")
</pallas_src>

<mosaic_0001>
module attributes {stable_mosaic.version = 11 : i64} {
  func.func @_lambertian_kernel(%arg0: i32, %arg1: memref<3x256x128xf32, #tpu.memory_space<vmem>>, %arg2: memref<256x128xf32, #tpu.memory_space<vmem>>, %arg3: memref<256x128xf32, #tpu.memory_space<vmem>>, %arg4: memref<4x256xf32, #tpu.memory_space<vmem>>) attributes {dimension_semantics = [#tpu.dimension_semantics<parallel>], iteration_bounds = array<i64: 1>, scalar_prefetch = 0 : i64, scratch_operands = 0 : i64, tpu.core_type = #tpu.core_type<tc>, window_params = [{transform_indices = @transform_0, window_bounds = array<i64: 3, 256, 128>}, {transform_indices = @transform_1, window_bounds = array<i64: 256, 128>}, {transform_indices = @transform_2, window_bounds = array<i64: 256, 128>}, {transform_indices = @transform_3, window_bounds = array<i64: 4, 256>}]} {
    %c0 = arith.constant 0 : index
    %c0_0 = arith.constant 0 : index
    %0 = vector.load %arg3[%c0, %c0_0] : memref<256x128xf32, #tpu.memory_space<vmem>>, vector<256x128xf32>
    %c0_1 = arith.constant 0 : index
    %c0_2 = arith.constant 0 : index
    %1 = vector.load %arg2[%c0_1, %c0_2] : memref<256x128xf32, #tpu.memory_space<vmem>>, vector<256x128xf32>
    %cst = arith.constant 0.899999976 : f32
    %2 = vector.broadcast %cst : f32 to vector<256x128xf32>
    %3 = arith.mulf %2, %1 : vector<256x128xf32>
    %cst_3 = arith.constant 1.000000e-01 : f32
    %4 = vector.broadcast %cst_3 : f32 to vector<256x128xf32>
    %5 = arith.addf %4, %3 : vector<256x128xf32>
    %6 = arith.mulf %0, %5 : vector<256x128xf32>
    %c0_4 = arith.constant 0 : index
    %c0_5 = arith.constant 0 : index
    %c0_6 = arith.constant 0 : index
    %7 = vector.load %arg1[%c0_4, %c0_5, %c0_6] : memref<3x256x128xf32, #tpu.memory_space<vmem>>, vector<3x256x128xf32>
    %8 = vector.shape_cast %6 : vector<256x128xf32> to vector<1x256x128xf32>
    %9 = vector.broadcast %8 : vector<1x256x128xf32> to vector<3x256x128xf32>
    %10 = arith.mulf %7, %9 : vector<3x256x128xf32>
    %cst_7 = arith.constant dense<0.000000e+00> : vector<3x256xf32>
    %11 = vector.multi_reduction <add>, %10, %cst_7 [2] : vector<3x256x128xf32> to vector<3x256xf32>
    %12 = vector.shape_cast %0 : vector<256x128xf32> to vector<1x256x128xf32>
    %cst_8 = arith.constant dense<0.000000e+00> : vector<1x256xf32>
    %13 = vector.multi_reduction <add>, %12, %cst_8 [2] : vector<1x256x128xf32> to vector<1x256xf32>
    %14 = tpu.concatenate %11, %13 in 0 : vector<3x256xf32>, vector<1x256xf32> -> vector<4x256xf32>
    %c0_9 = arith.constant 0 : index
    %c0_10 = arith.constant 0 : index
    %15 = vector.load %arg4[%c0_9, %c0_10] : memref<4x256xf32, #tpu.memory_space<vmem>>, vector<4x256xf32>
    tpu.vector_store %arg4[%c0_9, %c0_10], %14 {strides = array<i32>} : memref<4x256xf32, #tpu.memory_space<vmem>>, vector<4x256xf32>,
    return
  }
  func.func @transform_0(%arg0: i32) -> (i32, i32, i32) {
    %c0_i32 = arith.constant 0 : i32
    %c0_i32_0 = arith.constant 0 : i32
    %c0_i32_1 = arith.constant 0 : i32
    return %c0_i32, %arg0, %c0_i32_0 : i32, i32, i32
  }
  func.func @transform_1(%arg0: i32) -> (i32, i32) {
    %c0_i32 = arith.constant 0 : i32
    %c0_i32_0 = arith.constant 0 : i32
    return %arg0, %c0_i32 : i32, i32
  }
  func.func @transform_2(%arg0: i32) -> (i32, i32) {
    %c0_i32 = arith.constant 0 : i32
    %c0_i32_0 = arith.constant 0 : i32
    return %arg0, %c0_i32 : i32, i32
  }
  func.func @transform_3(%arg0: i32) -> (i32, i32) {
    %c0_i32 = arith.constant 0 : i32
    %c0_i32_0 = arith.constant 0 : i32
    return %c0_i32, %arg0 : i32, i32
  }
}

</mosaic_0001>

<bundles_post_ra>
// kernel: tpu_custom_call.1
= control target key start
LH: loop header
LB: loop body
LE: loop exit
PB: predicated region body
PF: predicated region fallthrough
CT: control target
= control target key end

     0   :  { %8 = vsyncpa [#allocation3], 0  ;;  %s1797_s0 = inlined_call_operand.hbm [shape: f32[3,256,128], index: 0, kind: input, shape index: {}]   ;;  %s1798_s1 = inlined_call_operand.hbm [shape: f32[256,128], index: 1, kind: input, shape index: {}]   ;;  %s1799_s2 = inlined_call_operand.hbm [shape: f32[256,128], index: 2, kind: input, shape index: {}]   ;;  %s1800_s3 = inlined_call_operand.hbm [shape: f32[4,256], index: 3, kind: output, shape index: {}]  }
   0x1   :  { %9 = vsyncpa [#allocation6], 0 }
   0x2   :  { %10 = vsyncpa [#allocation4], 0  ;;  %s28_s14 = sshll.u32 %s1798_s1, 4  ;;  %s1252_s15 = smov [#allocation5]   ;;  %s29_s14 = int_to_ptr.hbm [resolvable:$true] %s28_s14 }
   0x3   :  { %s30_s16 = sshll.u32 %s1252_s15, 4  ;;  %s15_s19 = sshll.u32 %s1797_s0, 4  ;;  %s31_s16 = int_to_ptr.vmem [resolvable:$true] %s30_s16  ;;  %s16_s19 = int_to_ptr.hbm [resolvable:$true] %s15_s19 }
   0x4   :  { %s1253_s20 = smov 128   ;;  %s1254_s21 = smov 8  }
   0x5   :  { %36 = dma.hbm_to_vmem [thread:$0]  %s29_s14, 4096, %s31_s16, [#allocation6], %s1253_s20, %s1253_s20, %s1254_s21  }
   0x6   :  { %s1255_s22 = smov [#allocation2]   ;;  %s41_s26 = sshll.u32 %s1799_s2, 4  ;;  %s42_s26 = int_to_ptr.hbm [resolvable:$true] %s41_s26 }
   0x7   :  { %s17_s23 = sshll.u32 %s1255_s22, 4  ;;  %s1256_s1 = smov [#allocation7]   ;;  %s18_s23 = int_to_ptr.vmem [resolvable:$true] %s17_s23 }
   0x8   :  { %23 = dma.hbm_to_vmem [thread:$0]  %s16_s19, 12288, %s18_s23, [#allocation3], %s1253_s20, %s1253_s20, %s1254_s21  }
   0x9   :  { %s43_s27 = sshll.u32 %s1256_s1, 4  ;;  %s44_s27 = int_to_ptr.vmem [resolvable:$true] %s43_s27 }
   0xa   :  { %49 = dma.hbm_to_vmem [thread:$0]  %s42_s26, 4096, %s44_s27, [#allocation6], %s1253_s20, %s1253_s20, %s1254_s21  }
   0xb   :  { %1246 = dma.done.wait [#allocation3], 12288  }
   0xc   :  { %1247 = vsyncadd [#allocation3], 4294955008 }
   0xd   :  { %1248 = dma.done.wait [#allocation6], 8192  }
   0xe   :  { %1249 = vsyncadd [#allocation6], 4294959104  ;;  %v98_v0 = vld [vmem:[#allocation5 + $0x20] sm:$0xff]  ;;  %v96_v2 = vld [vmem:[#allocation5 + $0x10] sm:$0xff]  ;;  %vm771_vm0 = vcmask 130112   ;;  %vm775_vm1 = vcmask 195712  }
   0xf   :  { %v130_v1 = vmul.f32 0.9, %v98_v0  ;;  %v66_v3 = vld [vmem:[#allocation7 + $0x20] sm:$0xff]  ;;  %v128_v4 = vmul.f32 0.9, %v96_v2  ;;  %v64_v7 = vld [vmem:[#allocation7 + $0x10] sm:$0xff] }
  0x10   :  { %v94_v5 = vld [vmem:[#allocation5] sm:$0xff]  ;;  %v99_v9 = vld [vmem:[#allocation5 + $0x28] sm:$0xff]  ;;  %v224_v15 = vld [vmem:[#allocation2 + $0x10] sm:$0xff]  ;;  %vm779_vm2 = vcmask 261312   ;;  %vm783_vm3 = vcmask 326912   ;;  %vm787_vm4 = vcmask 392512  }
  0x11   :  { %v162_v6 = vadd.f32 0.1, %v130_v1  ;;  %v126_v8 = vmul.f32 0.9, %v94_v5  ;;  %v226_v10 = vld [vmem:[#allocation2 + $0x20] sm:$0xff]  ;;  %v97_v18 = vld [vmem:[#allocation5 + $0x18] sm:$0xff] }
  0x12   :  { %v160_v11 = vadd.f32 0.1, %v128_v4  ;;  %v62_v12 = vld [vmem:[#allocation7] sm:$0xff]  ;;  %v131_v13 = vmul.f32 0.9, %v99_v9  ;;  %v67_v20 = vld [vmem:[#allocation7 + $0x28] sm:$0xff] }
  0x13   :  { %v1287_v14 = vmul.f32 %v162_v6, %v66_v3  ;;  %v158_v16 = vadd.f32 0.1, %v126_v8  ;;  %v222_v17 = vld [vmem:[#allocation2] sm:$0xff]  ;;  %v129_v22 = vmul.f32 0.9, %v97_v18  ;;  %v95_v23 = vld [vmem:[#allocation5 + $0x8] sm:$0xff] }
  0x14   :  { %v1289_v19 = vmul.f32 %v160_v11, %v64_v7  ;;  %v163_v21 = vadd.f32 0.1, %v131_v13  ;;  %v65_v26 = vld [vmem:[#allocation7 + $0x18] sm:$0xff]  ;;  %v127_v27 = vmul.f32 0.9, %v95_v23  ;;  %v102_v28 = vld [vmem:[#allocation5 + $0x40] sm:$0xff] }
  0x15   :  { %v322_v24 = vmul.f32 %v226_v10, %v1287_v14  ;;  %v1292_v25 = vmul.f32 %v158_v16, %v62_v12  ;;  %v161_v30 = vadd.f32 0.1, %v129_v22  ;;  %v63_v31 = vld [vmem:[#allocation7 + $0x8] sm:$0xff]  ;;  %v101_v32 = vld [vmem:[#allocation5 + $0x38] sm:$0xff]  ;;  %v134_v36 = vmul.f32 0.9, %v102_v28 }
  0x16   :  { %v320_v29 = vmul.f32 %v224_v15, %v1289_v19  ;;  %v1296_v34 = vmul.f32 %v163_v21, %v67_v20  ;;  %v159_v35 = vadd.f32 0.1, %v127_v27  ;;  %v227_v37 = vld [vmem:[#allocation2 + $0x28] sm:$0xff]  ;;  %v133_v39 = vmul.f32 0.9, %v101_v32  ;;  %v100_v40 = vld [vmem:[#allocation5 + $0x30] sm:$0xff] }
  0x17   :  { %422 = vadd.xlane.f32.xlu2 %v322_v24  ;;  %v318_v33 = vmul.f32 %v222_v17, %v1292_v25  ;;  %v1298_v38 = vmul.f32 %v161_v30, %v65_v26  ;;  %v225_v41 = vld [vmem:[#allocation2 + $0x18] sm:$0xff]  ;;  %v132_v43 = vmul.f32 0.9, %v100_v40  ;;  %v223_v44 = vld [vmem:[#allocation2 + $0x8] sm:$0xff]  ;;  %v166_v46 = vadd.f32 0.1, %v134_v36 }
  0x18   :  { %418 = vadd.xlane.f32.xlu1 %v320_v29  ;;  %v1300_v42 = vmul.f32 %v159_v35, %v63_v31  ;;  %v323_v45 = vmul.f32 %v227_v37, %v1296_v34  ;;  %v70_v48 = vld [vmem:[#allocation7 + $0x40] sm:$0xff]  ;;  %v165_v49 = vadd.f32 0.1, %v133_v39  ;;  %v105_v50 = vld [vmem:[#allocation5 + $0x58] sm:$0xff]  ;;  %v104_v54 = vld [vmem:[#allocation5 + $0x50] sm:$0xff]  ;;  %vm791_vm5 = vcmask 458112  }
  0x19   :  { %414 = vadd.xlane.f32.xlu0 %v318_v33  ;;  %v321_v47 = vmul.f32 %v225_v41, %v1298_v38  ;;  %v69_v52 = vld [vmem:[#allocation7 + $0x38] sm:$0xff]  ;;  %v164_v53 = vadd.f32 0.1, %v132_v43  ;;  %v68_v55 = vld [vmem:[#allocation7 + $0x30] sm:$0xff]  ;;  %v103_v56 = vld [vmem:[#allocation5 + $0x48] sm:$0xff]  ;;  %v1305_v57 = vmul.f32 %v166_v46, %v70_v48  ;;  %vm795_vm6 = vcmask 523712  }
  0x1a   :  { %v319_v51 = vmul.f32 %v223_v44, %v1300_v42  ;;  %v137_v58 = vmul.f32 0.9, %v105_v50  ;;  %v230_v59 = vld [vmem:[#allocation2 + $0x40] sm:$0xff]  ;;  %v1307_v60 = vmul.f32 %v165_v49, %v69_v52  ;;  %v136_v61 = vmul.f32 0.9, %v104_v54  ;;  %v229_v62 = vld [vmem:[#allocation2 + $0x38] sm:$0xff] }
  0x1b   :  { %v1309_v63 = vmul.f32 %v164_v53, %v68_v55  ;;  %v135_v0 = vmul.f32 0.9, %v103_v56  ;;  %v228_v1 = vld [vmem:[#allocation2 + $0x30] sm:$0xff]  ;;  %v326_v2 = vmul.f32 %v230_v59, %v1305_v57  ;;  %v73_v5 = vld [vmem:[#allocation7 + $0x58] sm:$0xff]  ;;  %v107_v11 = vld [vmem:[#allocation5 + $0x68] sm:$0xff]  ;;  %vm799_vm7 = vcmask 589312  }
  0x1c   :  { %v169_v3 = vadd.f32 0.1, %v137_v58  ;;  %v325_v4 = vmul.f32 %v229_v62, %v1307_v60  ;;  %v168_v6 = vadd.f32 0.1, %v136_v61  ;;  %v108_v7 = vld [vmem:[#allocation5 + $0x70] sm:$0xff]  ;;  %v71_v12 = vld [vmem:[#allocation7 + $0x48] sm:$0xff] }
  0x1d   :  { %v324_v8 = vmul.f32 %v228_v1, %v1309_v63  ;;  %v72_v9 = vld [vmem:[#allocation7 + $0x50] sm:$0xff]  ;;  %v167_v10 = vadd.f32 0.1, %v135_v0  ;;  %v106_v13 = vld [vmem:[#allocation5 + $0x60] sm:$0xff]  ;;  %v140_v16 = vmul.f32 0.9, %v108_v7 }
  0x1e   :  { %v1314_v15 = vmul.f32 %v169_v3, %v73_v5  ;;  %v233_v17 = vld [vmem:[#allocation2 + $0x58] sm:$0xff]  ;;  %v1316_v18 = vmul.f32 %v168_v6, %v72_v9  ;;  %v139_v20 = vmul.f32 0.9, %v107_v11  ;;  %v232_v21 = vld [vmem:[#allocation2 + $0x50] sm:$0xff]  ;;  %v138_v23 = vmul.f32 0.9, %v106_v13 }
  0x1f   :  { %424 = vadd.xlane.f32.xlu2 %v323_v45  ;;  %v1318_v22 = vmul.f32 %v167_v10, %v71_v12  ;;  %v231_v24 = vld [vmem:[#allocation2 + $0x48] sm:$0xff]  ;;  %v172_v27 = vadd.f32 0.1, %v140_v16  ;;  %v76_v29 = vld [vmem:[#allocation7 + $0x70] sm:$0xff]  ;;  %v110_v36 = vld [vmem:[#allocation5 + $0x80] sm:$0xff]  ;;  %vm803_vm8 = vcmask 654912  }
  0x20   :  { %420 = vadd.xlane.f32.xlu1 %v321_v47  ;;  %v329_v26 = vmul.f32 %v233_v17, %v1314_v15  ;;  %v328_v28 = vmul.f32 %v232_v21, %v1316_v18  ;;  %v171_v30 = vadd.f32 0.1, %v139_v20  ;;  %v111_v31 = vld [vmem:[#allocation5 + $0x88] sm:$0xff]  ;;  %v170_v35 = vadd.f32 0.1, %v138_v23  ;;  %v74_v37 = vld [vmem:[#allocation7 + $0x60] sm:$0xff] }
  0x21   :  { %416 = vadd.xlane.f32.xlu0 %v319_v51  ;;  %v327_v32 = vmul.f32 %v231_v24, %v1318_v22  ;;  %v75_v33 = vld [vmem:[#allocation7 + $0x68] sm:$0xff]  ;;  %v109_v39 = vld [vmem:[#allocation5 + $0x78] sm:$0xff]  ;;  %v1323_v40 = vmul.f32 %v172_v27, %v76_v29  ;;  %v143_v41 = vmul.f32 0.9, %v111_v31  ;;  %v236_v43 = vld [vmem:[#allocation2 + $0x70] sm:$0xff]  ;;  %vm807_vm9 = vcmask 720512  }
  0x22   :  { %v1325_v44 = vmul.f32 %v171_v30, %v75_v33  ;;  %v142_v45 = vmul.f32 0.9, %v110_v36  ;;  %v235_v46 = vld [vmem:[#allocation2 + $0x68] sm:$0xff]  ;;  %v1327_v47 = vmul.f32 %v170_v35, %v74_v37  ;;  %v141_v48 = vmul.f32 0.9, %v109_v39  ;;  %v234_v49 = vld [vmem:[#allocation2 + $0x60] sm:$0xff] }
  0x23   :  { %v332_v50 = vmul.f32 %v236_v43, %v1323_v40  ;;  %v175_v51 = vadd.f32 0.1, %v143_v41  ;;  %v79_v53 = vld [vmem:[#allocation7 + $0x88] sm:$0xff]  ;;  %v114_v55 = vld [vmem:[#allocation5 + $0xa0] sm:$0xff]  ;;  %v113_v61 = vld [vmem:[#allocation5 + $0x98] sm:$0xff]  ;;  %vm811_vm10 = vcmask 786112  }
  0x24   :  { %v331_v52 = vmul.f32 %v235_v46, %v1325_v44  ;;  %v174_v54 = vadd.f32 0.1, %v142_v45  ;;  %v330_v56 = vmul.f32 %v234_v49, %v1327_v47  ;;  %v78_v58 = vld [vmem:[#allocation7 + $0x80] sm:$0xff]  ;;  %v173_v59 = vadd.f32 0.1, %v141_v48  ;;  %v77_v62 = vld [vmem:[#allocation7 + $0x78] sm:$0xff] }
  0x25   :  { %v112_v0 = vld [vmem:[#allocation5 + $0x90] sm:$0xff]  ;;  %v1332_v1 = vmul.f32 %v175_v51, %v79_v53  ;;  %v239_v3 = vld [vmem:[#allocation2 + $0x88] sm:$0xff]  ;;  %v145_v5 = vmul.f32 0.9, %v113_v61  ;;  %v238_v6 = vld [vmem:[#allocation2 + $0x80] sm:$0xff]  ;;  %vm815_vm11 = vcmask 851712  }
  0x26   :  { %v1336_v7 = vmul.f32 %v173_v59, %v77_v62  ;;  %v237_v9 = vld [vmem:[#allocation2 + $0x78] sm:$0xff]  ;;  %v82_v13 = vld [vmem:[#allocation7 + $0xa0] sm:$0xff]  ;;  %v116_v24 = vld [vmem:[#allocation5 + $0xb0] sm:$0xff]  ;;  %vm819_vm12 = vcmask 917312   ;;  %vm823_vm13 = vcmask 982912   ;;  %vm827_vm14 = vcmask 1048512  }
  0x27   :  { %430 = vadd.xlane.f32.xlu2 %v326_v2  ;;  %v146_v2 = vmul.f32 0.9, %v114_v55  ;;  %v335_v10 = vmul.f32 %v239_v3, %v1332_v1  ;;  %v177_v16 = vadd.f32 0.1, %v145_v5  ;;  %v117_v17 = vld [vmem:[#allocation5 + $0xb8] sm:$0xff]  ;;  %v115_v27 = vld [vmem:[#allocation5 + $0xa8] sm:$0xff] }
  0x28   :  { %428 = vadd.xlane.f32.xlu1 %v325_v4  ;;  %v1334_v4 = vmul.f32 %v174_v54, %v78_v58  ;;  %v333_v20 = vmul.f32 %v237_v9, %v1336_v7  ;;  %v81_v21 = vld [vmem:[#allocation7 + $0x98] sm:$0xff]  ;;  %v149_v29 = vmul.f32 0.9, %v117_v17  ;;  %v242_v30 = vld [vmem:[#allocation2 + $0xa0] sm:$0xff]  ;;  %v147_v36 = vmul.f32 0.9, %v115_v27 }
  0x29   :  { %426 = vadd.xlane.f32.xlu0 %v324_v8  ;;  %v144_v8 = vmul.f32 0.9, %v112_v0  ;;  %v178_v11 = vadd.f32 0.1, %v146_v2  ;;  %v1343_v31 = vmul.f32 %v177_v16, %v81_v21  ;;  %v241_v33 = vld [vmem:[#allocation2 + $0x98] sm:$0xff]  ;;  %v240_v37 = vld [vmem:[#allocation2 + $0x90] sm:$0xff] }
  0x2a   :  { %v334_v12 = vmul.f32 %v238_v6, %v1334_v4  ;;  %v181_v41 = vadd.f32 0.1, %v149_v29  ;;  %v85_v45 = vld [vmem:[#allocation7 + $0xb8] sm:$0xff]  ;;  %v120_v48 = vld [vmem:[#allocation5 + $0xd0] sm:$0xff]  ;;  %v179_v51 = vadd.f32 0.1, %v147_v36 }
  0x2b   :  { %v176_v23 = vadd.f32 0.1, %v144_v8  ;;  %v337_v43 = vmul.f32 %v241_v33, %v1343_v31  ;;  %v83_v53 = vld [vmem:[#allocation7 + $0xa8] sm:$0xff]  ;;  %v118_v54 = vld [vmem:[#allocation5 + $0xc0] sm:$0xff]  ;;  %v245_v58 = vld [vmem:[#allocation2 + $0xb8] sm:$0xff]  ;;  %vm984_vm15 = vcmask 1041409  }
  0x2c   :  { %v1350_v55 = vmul.f32 %v181_v41, %v85_v45  ;;  %v244_v62 = vld [vmem:[#allocation2 + $0xb0] sm:$0xff]  ;;  %v1354_v0 = vmul.f32 %v179_v51, %v83_v53  ;;  %v150_v2 = vmul.f32 0.9, %v118_v54  ;;  %v243_v3 = vld [vmem:[#allocation2 + $0xa8] sm:$0xff]  ;;  %v122_v17 = vld [vmem:[#allocation5 + $0xe0] sm:$0xff]  ;;  %s1257_s0 = smov [#allocation8]  }
  0x2d   :  { %v88_v9 = vld [vmem:[#allocation7 + $0xd0] sm:$0xff]  ;;  %v121_v21 = vld [vmem:[#allocation5 + $0xd8] sm:$0xff]  ;;  %v154_v29 = vmul.f32 0.9, %v122_v17  ;;  %v246_v36 = vld [vmem:[#allocation2 + $0xc0] sm:$0xff]  ;;  %s1103_s2 = sshll.u32 %s1257_s0, 4  ;;  %s1104_s2 = int_to_ptr.vmem [resolvable:$true] %s1103_s2 }
  0x2e   :  { %v341_v5 = vmul.f32 %v245_v58, %v1350_v55  ;;  %v182_v16 = vadd.f32 0.1, %v150_v2  ;;  %v153_v33 = vmul.f32 0.9, %v121_v21  ;;  %v1371_v51 = vld [vmem:[#allocation7 + $0xd8] sm:$0xff]  ;;  %v251_v54 = vld [vmem:[#allocation2 + $0xe8] sm:$0xff] }
  0x2f   :  { %436 = vadd.xlane.f32.xlu2 %v329_v26  ;;  %v80_v26 = vld [vmem:[#allocation7 + $0x90] sm:$0xff]  ;;  %v186_v45 = vadd.f32 0.1, %v154_v29  ;;  %1809 = vst [vmem:[#allocation14_spill] sm:$0xff] %v1371_v51  ;;  %v253_v17 = vld [vmem:[#allocation2 + $0xf8] sm:$0xff]  ;;  %s1105_s30 = sshll.u32 %s1800_s3, 4  ;;  %s1106_s30 = int_to_ptr.hbm [resolvable:$true] %s1105_s30 }
  0x30   :  { %434 = vadd.xlane.f32.xlu1 %v328_v28  ;;  %v1341_v28 = vmul.f32 %v178_v11, %v82_v13  ;;  %v1345_v35 = vmul.f32 %v176_v23, %v80_v26  ;;  %v123_v11 = vld [vmem:[#allocation5 + $0xe8] sm:$0xff]  ;;  %v248_v26 = vld [vmem:[#allocation2 + $0xd0] sm:$0xff] }
  0x31   :  { %432 = vadd.xlane.f32.xlu0 %v327_v32  ;;  %v148_v32 = vmul.f32 0.9, %v116_v24  ;;  %v87_v13 = vld [vmem:[#allocation7 + $0xc8] sm:$0xff]  ;;  %v155_v24 = vmul.f32 0.9, %v123_v11 }
  0x32   :  { %v338_v39 = vmul.f32 %v242_v30, %v1341_v28  ;;  %v336_v49 = vmul.f32 %v240_v37, %v1345_v35  ;;  %v247_v30 = vld [vmem:[#allocation2 + $0xc8] sm:$0xff] }
  0x33   :  { %v180_v46 = vadd.f32 0.1, %v148_v32 }
  0x37   :  { %442 = vadd.xlane.f32.xlu2 %v332_v50  ;;  %v84_v50 = vld [vmem:[#allocation7 + $0xb0] sm:$0xff] }
  0x38   :  { %440 = vadd.xlane.f32.xlu1 %v331_v52  ;;  %v119_v52 = vld [vmem:[#allocation5 + $0xc8] sm:$0xff]  ;;  %v1352_v59 = vmul.f32 %v180_v46, %v84_v50  ;;  %v125_v50 = vld [vmem:[#allocation5 + $0xf8] sm:$0xff] }
  0x39   :  { %438 = vadd.xlane.f32.xlu0 %v330_v56  ;;  %v152_v56 = vmul.f32 0.9, %v120_v48  ;;  %v151_v61 = vmul.f32 0.9, %v119_v52  ;;  %v90_v48 = vld [vmem:[#allocation7 + $0xe0] sm:$0xff]  ;;  %v124_v52 = vld [vmem:[#allocation5 + $0xf0] sm:$0xff] }
  0x3a   :  { %v340_v8 = vmul.f32 %v244_v62, %v1352_v59  ;;  %v157_v58 = vmul.f32 0.9, %v125_v50  ;;  %v156_v2 = vmul.f32 0.9, %v124_v52 }
  0x3b   :  { %v184_v6 = vadd.f32 0.1, %v152_v56  ;;  %v1375_v56 = vmul.f32 %v186_v45, %v90_v48  ;;  %v260_v45 = vld [vmem:[#allocation2 + $0x130] sm:$0xff]  ;;  %v258_v48 = vld [vmem:[#allocation2 + $0x120] sm:$0xff] }
  0x3c   :  { %v188_v11 = vadd.f32 0.1, %v156_v2  ;;  %v354_v52 = vmul.f32 %v258_v48, %v1287_v14 }
  0x3d   :  { %v1361_v23 = vmul.f32 %v184_v6, %v88_v9 }
  0x3f   :  { %448 = vadd.xlane.f32.xlu2 %v335_v10  ;;  %v183_v10 = vadd.f32 0.1, %v151_v61  ;;  %1808 = vst [vmem:[#allocation13_spill] sm:$0xff] %v1361_v23  ;;  %v344_v37 = vmul.f32 %v248_v26, %v1361_v23  ;;  %v250_v61 = vld [vmem:[#allocation2 + $0xe0] sm:$0xff] }
  0x40   :  { %446 = vadd.xlane.f32.xlu1 %v334_v12  ;;  %v339_v12 = vmul.f32 %v243_v3, %v1354_v0  ;;  %v249_v3 = vld [vmem:[#allocation2 + $0xd8] sm:$0xff]  ;;  %v346_v6 = vmul.f32 %v250_v61, %v1375_v56 }
  0x41   :  { %444 = vadd.xlane.f32.xlu0 %v333_v20  ;;  %v1359_v20 = vld [vmem:[#allocation7 + $0xc0] sm:$0xff]  ;;  %v1363_v27 = vmul.f32 %v183_v10, %v87_v13  ;;  %v1383_v10 = vld [vmem:[#allocation7 + $0xf8] sm:$0xff] }
  0x42   :  { %1807 = vst [vmem:[#allocation12_spill] sm:$0xff] %v1359_v20  ;;  %v1366_v32 = vmul.f32 %v182_v16, %v1359_v20  ;;  %v254_v16 = vld [vmem:[#allocation2 + $0x100] sm:$0xff]  ;;  %v261_v61 = vld [vmem:[#allocation2 + $0x138] sm:$0xff] }
  0x43   :  { %v343_v41 = vmul.f32 %v247_v30, %v1363_v27  ;;  %1810 = vst [vmem:[#allocation15_spill] sm:$0xff] %v1383_v10  ;;  %v350_v26 = vmul.f32 %v254_v16, %v1292_v25  ;;  %v282_v20 = vld [vmem:[#allocation2 + $0x1e0] sm:$0xff] }
  0x44   :  { %v342_v46 = vmul.f32 %v246_v36, %v1366_v32  ;;  %v256_v36 = vld [vmem:[#allocation2 + $0x110] sm:$0xff] }
  0x47   :  { %454 = vadd.xlane.f32.xlu2 %v338_v39  ;;  %v187_v39 = vadd.f32 0.1, %v155_v24  ;;  %v252_v24 = vld [vmem:[#allocation2 + $0xf0] sm:$0xff] }
  0x48   :  { %452 = vadd.xlane.f32.xlu1 %v337_v43  ;;  %v91_v43 = vld [vmem:[#allocation7 + $0xe8] sm:$0xff] }
  0x49   :  { %450 = vadd.xlane.f32.xlu0 %v336_v49  ;;  %v185_v49 = vadd.f32 0.1, %v153_v33  ;;  %v1373_v53 = vmul.f32 %v187_v39, %v91_v43  ;;  %v257_v33 = vld [vmem:[#allocation2 + $0x118] sm:$0xff] }
  0x4a   :  { %v353_v39 = vmul.f32 %v257_v33, %v1298_v38  ;;  %v267_v33 = vld [vmem:[#allocation2 + $0x168] sm:$0xff] }
  0x4b   :  { %v1378_v62 = vmul.f32 %v185_v49, %v1371_v51  ;;  %v356_v49 = vmul.f32 %v260_v45, %v1309_v63 }
  0x4d   :  { %v345_v9 = vmul.f32 %v249_v3, %v1378_v62 }
  0x4f   :  { %460 = vadd.xlane.f32.xlu2 %v341_v5  ;;  %v347_v5 = vmul.f32 %v251_v54, %v1373_v53  ;;  %v263_v54 = vld [vmem:[#allocation2 + $0x148] sm:$0xff] }
  0x50   :  { %458 = vadd.xlane.f32.xlu1 %v340_v8  ;;  %v189_v8 = vadd.f32 0.1, %v157_v58  ;;  %v262_v58 = vld [vmem:[#allocation2 + $0x140] sm:$0xff]  ;;  %v359_v2 = vmul.f32 %v263_v54, %v1318_v22 }
  0x51   :  { %456 = vadd.xlane.f32.xlu0 %v339_v12  ;;  %v1385_v12 = vld [vmem:[#allocation7 + $0xf0] sm:$0xff]  ;;  %v358_v3 = vmul.f32 %v262_v58, %v1305_v57  ;;  %v270_v58 = vld [vmem:[#allocation2 + $0x180] sm:$0xff] }
  0x52   :  { %1811 = vst [vmem:[#allocation16_spill] sm:$0xff] %v1385_v12  ;;  %v1388_v13 = vmul.f32 %v189_v8, %v1383_v10  ;;  %v1391_v21 = vmul.f32 %v188_v11, %v1385_v12  ;;  %v265_v8 = vld [vmem:[#allocation2 + $0x158] sm:$0xff] }
  0x53   :  { %v361_v16 = vmul.f32 %v265_v8, %v1314_v15 }
  0x54   :  { %1812 = vst [vmem:[#allocation17_spill] sm:$0xff] %v1391_v21  ;;  %v349_v29 = vmul.f32 %v253_v17, %v1388_v13  ;;  %v348_v30 = vmul.f32 %v252_v24, %v1391_v21  ;;  %v269_v24 = vld [vmem:[#allocation2 + $0x178] sm:$0xff] }
  0x57   :  { %466 = vadd.xlane.f32.xlu2 %v344_v37  ;;  %v255_v37 = vld [vmem:[#allocation2 + $0x108] sm:$0xff] }
  0x58   :  { %464 = vadd.xlane.f32.xlu1 %v343_v41  ;;  %v352_v41 = vmul.f32 %v256_v36, %v1289_v19  ;;  %v351_v43 = vmul.f32 %v255_v37, %v1300_v42  ;;  %v365_v37 = vmul.f32 %v269_v24, %v1336_v7 }
  0x59   :  { %462 = vadd.xlane.f32.xlu0 %v342_v46  ;;  %v259_v46 = vld [vmem:[#allocation2 + $0x128] sm:$0xff] }
  0x5a   :  { %v355_v50 = vmul.f32 %v259_v46, %v1296_v34  ;;  %v272_v46 = vld [vmem:[#allocation2 + $0x190] sm:$0xff] }
  0x5f   :  { %472 = vadd.xlane.f32.xlu2 %v347_v5  ;;  %v357_v5 = vmul.f32 %v261_v61, %v1307_v60 }
  0x60   :  { %470 = vadd.xlane.f32.xlu1 %v346_v6  ;;  %v266_v6 = vld [vmem:[#allocation2 + $0x160] sm:$0xff] }
  0x61   :  { %468 = vadd.xlane.f32.xlu0 %v345_v9  ;;  %v264_v9 = vld [vmem:[#allocation2 + $0x150] sm:$0xff]  ;;  %v362_v11 = vmul.f32 %v266_v6, %v1327_v47 }
  0x62   :  { %v360_v17 = vmul.f32 %v264_v9, %v1316_v18 }
  0x67   :  { %478 = vadd.xlane.f32.xlu2 %v350_v26  ;;  %v268_v26 = vld [vmem:[#allocation2 + $0x170] sm:$0xff] }
  0x68   :  { %476 = vadd.xlane.f32.xlu1 %v349_v29  ;;  %v766_v29 = vlaneseq }
  0x69   :  { %474 = vadd.xlane.f32.xlu0 %v348_v30 }
  0x6a   :  { %v1411_v45 = vand.u32 127, %v766_v29 }
  0x6c   :  { %v1414_v48 = vadd.s32 4294967272, %v1411_v45  ;;  %v1423_v61 = vadd.s32 4294967256, %v1411_v45 }
  0x6f   :  { %484 = vadd.xlane.f32.xlu2 %v353_v39 }
  0x70   :  { %482 = vadd.xlane.f32.xlu1 %v352_v41  ;;  %v364_v41 = vmul.f32 %v268_v26, %v1323_v40 }
  0x71   :  { %480 = vadd.xlane.f32.xlu0 %v351_v43  ;;  %v363_v43 = vmul.f32 %v267_v33, %v1325_v44 }
  0x77   :  { %490 = vadd.xlane.f32.xlu2 %v356_v49  ;;  %v1417_v49 = vadd.s32 4294967288, %v1411_v45 }
  0x78   :  { %488 = vadd.xlane.f32.xlu1 %v355_v50  ;;  %v271_v50 = vld [vmem:[#allocation2 + $0x188] sm:$0xff] }
  0x79   :  { %486 = vadd.xlane.f32.xlu0 %v354_v52  ;;  %v1420_v52 = vadd.s32 4294967280, %v1411_v45  ;;  %v367_v8 = vmul.f32 %v271_v50, %v1332_v1  ;;  %v274_v50 = vld [vmem:[#allocation2 + $0x1a0] sm:$0xff] }
  0x7f   :  { %496 = vadd.xlane.f32.xlu2 %v359_v2 }
  0x80   :  { %494 = vadd.xlane.f32.xlu1 %v358_v3  ;;  %v368_v3 = vmul.f32 %v272_v46, %v1345_v35  ;;  %v1447_v46 = vadd.s32 4294967248, %v1411_v45 }
  0x81   :  { %492 = vadd.xlane.f32.xlu0 %v357_v5  ;;  %v1427_v5 = vadd.s32 4294967264, %v1411_v45 }
  0x87   :  { %502 = vadd.xlane.f32.xlu2 %v362_v11 }
  0x88   :  { %500 = vadd.xlane.f32.xlu1 %v361_v16 }
  0x89   :  { %498 = vadd.xlane.f32.xlu0 %v360_v17  ;;  %v366_v17 = vmul.f32 %v270_v58, %v1334_v4  ;;  %v273_v58 = vld [vmem:[#allocation2 + $0x198] sm:$0xff] }
  0x8a   :  { %v423_v30 = vpop.xlane.xlu2 %422 }
  0x8b   :  { %v419_v36 = vpop.xlane.xlu1 %418  ;;  %v782_v33 = vperm.slane %v423_v30, %v1427_v5 }
  0x8c   :  { %v415_v39 = vpop.xlane.xlu0 %414  ;;  %v774_v24 = vperm.slane %v419_v36, %v1420_v52  ;;  %v1444_v36 = vadd.s32 4294967232, %v1411_v45 }
  0x8d   :  { %v768_v9 = vperm.slane %v415_v39, %v1411_v45  ;;  %v1440_v39 = vadd.s32 4294967240, %v1411_v45 }
  0x8f   :  { %508 = vadd.xlane.f32.xlu2 %v365_v37 }
  0x90   :  { %506 = vadd.xlane.f32.xlu1 %v364_v41  ;;  %v275_v41 = vld [vmem:[#allocation2 + $0x1a8] sm:$0xff] }
  0x91   :  { %504 = vadd.xlane.f32.xlu0 %v363_v43 }
  0x92   :  { %v425_v54 = vpop.xlane.xlu2 %424 }
  0x93   :  { %v421_v2 = vpop.xlane.xlu1 %420  ;;  %v786_v26 = vperm.slane %v425_v54, %v1423_v61 }
  0x94   :  { %v417_v6 = vpop.xlane.xlu0 %416  ;;  %v778_v11 = vperm.slane %v421_v2, %v1414_v48 }
  0x95   :  { %v770_v16 = vperm.slane %v417_v6, %v1417_v49  ;;  %v371_v6 = vmul.f32 %v275_v41, %v1354_v0  ;;  %v1463_v41 = vadd.s32 4294967208, %v1411_v45 }
  0x97   :  { %v772_v29 = vsel %vm771_vm0, %v770_v16, %v768_v9  ;;  %514 = vadd.xlane.f32.xlu2 %v368_v3 }
  0x98   :  { %v776_v37 = vsel %vm775_vm1, %v774_v24, %v772_v29  ;;  %512 = vadd.xlane.f32.xlu1 %v367_v8  ;;  %v369_v24 = vmul.f32 %v273_v58, %v1343_v31  ;;  %v276_v58 = vld [vmem:[#allocation2 + $0x1b0] sm:$0xff] }
  0x99   :  { %v780_v43 = vsel %vm779_vm2, %v778_v11, %v776_v37  ;;  %510 = vadd.xlane.f32.xlu0 %v366_v17  ;;  %v370_v11 = vmul.f32 %v274_v50, %v1341_v28  ;;  %v278_v37 = vld [vmem:[#allocation2 + $0x1c0] sm:$0xff]  ;;  %v1467_v50 = vadd.s32 4294967224, %v1411_v45 }
  0x9a   :  { %v431_v54 = vpop.xlane.xlu2 %430  ;;  %v784_v30 = vsel %vm783_vm3, %v782_v33, %v780_v43  ;;  %v1460_v33 = vadd.s32 4294967216, %v1411_v45 }
  0x9b   :  { %v429_v2 = vpop.xlane.xlu1 %428  ;;  %v788_v3 = vsel %vm787_vm4, %v786_v26, %v784_v30  ;;  %v798_v16 = vperm.slane %v431_v54, %v1444_v36  ;;  %v277_v54 = vld [vmem:[#allocation2 + $0x1b8] sm:$0xff] }
  0x9c   :  { %v794_v8 = vperm.slane %v429_v2, %v1440_v39  ;;  %v427_v9 = vpop.xlane.xlu0 %426 }
  0x9d   :  { %v790_v17 = vperm.slane %v427_v9, %v1447_v46  ;;  %v373_v9 = vmul.f32 %v277_v54, %v1350_v55  ;;  %v1481_v54 = vadd.s32 4294967184, %v1411_v45 }
  0x9f   :  { %v792_v29 = vsel %vm791_vm5, %v790_v17, %v788_v3  ;;  %520 = vadd.xlane.f32.xlu2 %v371_v6  ;;  %v374_v3 = vmul.f32 %v278_v37, %v1366_v32  ;;  %v372_v17 = vmul.f32 %v276_v58, %v1352_v59  ;;  %v281_v37 = vld [vmem:[#allocation2 + $0x1d8] sm:$0xff]  ;;  %v280_v58 = vld [vmem:[#allocation2 + $0x1d0] sm:$0xff] }
  0xa0   :  { %v796_v26 = vsel %vm795_vm6, %v794_v8, %v792_v29  ;;  %518 = vadd.xlane.f32.xlu1 %v370_v11 }
  0xa1   :  { %516 = vadd.xlane.f32.xlu0 %v369_v24  ;;  %v800_v43 = vsel %vm799_vm7, %v798_v16, %v796_v26  ;;  %v1478_v26 = vadd.s32 4294967192, %v1411_v45 }
  0xa2   :  { %v437_v30 = vpop.xlane.xlu2 %436 }
  0xa3   :  { %v435_v2 = vpop.xlane.xlu1 %434  ;;  %v810_v11 = vperm.slane %v437_v30, %v1463_v41 }
  0xa4   :  { %v806_v6 = vperm.slane %v435_v2, %v1460_v33  ;;  %v433_v8 = vpop.xlane.xlu0 %432  ;;  %v1485_v2 = vadd.s32 4294967200, %v1411_v45 }
  0xa5   :  { %v802_v16 = vperm.slane %v433_v8, %v1467_v50 }
  0xa7   :  { %v804_v24 = vsel %vm803_vm8, %v802_v16, %v800_v43  ;;  %526 = vadd.xlane.f32.xlu2 %v374_v3  ;;  %v279_v43 = vld [vmem:[#allocation2 + $0x1c8] sm:$0xff] }
  0xa8   :  { %v808_v29 = vsel %vm807_vm9, %v806_v6, %v804_v24  ;;  %524 = vadd.xlane.f32.xlu1 %v373_v9  ;;  %v377_v6 = vmul.f32 %v281_v37, %v1378_v62  ;;  %v284_v37 = vld [vmem:[#allocation2 + $0x1f0] sm:$0xff] }
  0xa9   :  { %522 = vadd.xlane.f32.xlu0 %v372_v17  ;;  %v812_v30 = vsel %vm811_vm10, %v810_v11, %v808_v29  ;;  %v376_v17 = vmul.f32 %v280_v58, %v1361_v23  ;;  %v375_v29 = vmul.f32 %v279_v43, %v1363_v27  ;;  %v1497_v58 = vadd.s32 4294967176, %v1411_v45 }
  0xaa   :  { %v443_v8 = vpop.xlane.xlu2 %442  ;;  %v380_v23 = vmul.f32 %v284_v37, %v1391_v21  ;;  %v285_v37 = vld [vmem:[#allocation2 + $0x1f8] sm:$0xff] }
  0xab   :  { %v441_v3 = vpop.xlane.xlu1 %440  ;;  %v822_v24 = vperm.slane %v443_v8, %v1481_v54  ;;  %v283_v8 = vld [vmem:[#allocation2 + $0x1e8] sm:$0xff] }
  0xac   :  { %v818_v9 = vperm.slane %v441_v3, %v1478_v26  ;;  %v439_v16 = vpop.xlane.xlu0 %438 }
  0xad   :  { %v814_v11 = vperm.slane %v439_v16, %v1485_v2 }
  0xaf   :  { %v816_v12 = vsel %vm815_vm11, %v814_v11, %v812_v30  ;;  %532 = vadd.xlane.f32.xlu2 %v377_v6  ;;  %v379_v6 = vmul.f32 %v283_v8, %v1373_v53  ;;  %v286_v11 = vld [vmem:[#allocation2 + $0x200] sm:$0xff] }
  0xb0   :  { %v820_v10 = vsel %vm819_vm12, %v818_v9, %v816_v12  ;;  %530 = vadd.xlane.f32.xlu1 %v376_v17 }
  0xb1   :  { %528 = vadd.xlane.f32.xlu0 %v375_v29  ;;  %v824_v3 = vsel %vm823_vm13, %v822_v24, %v820_v10  ;;  %v378_v10 = vmul.f32 %v282_v20, %v1375_v56  ;;  %v382_v20 = vmul.f32 %v286_v11, %v1292_v25 }
  0xb2   :  { %v449_v51 = vpop.xlane.xlu2 %448 }
  0xb3   :  { %v830_v16 = vperm.slane %v449_v51, %v1417_v49  ;;  %v447_v43 = vpop.xlane.xlu1 %446  ;;  %v287_v51 = vld [vmem:[#allocation2 + $0x208] sm:$0xff] }
  0xb4   :  { %v829_v30 = vperm.slane %v447_v43, %v1411_v45  ;;  %v445_v12 = vpop.xlane.xlu0 %444  ;;  %v383_v21 = vmul.f32 %v287_v51, %v1300_v42 }
  0xb5   :  { %v826_v9 = vperm.slane %v445_v12, %v1497_v58 }
  0xb6   :  { %v831_v17 = vsel %vm771_vm0, %v830_v16, %v829_v30 }
  0xb7   :  { %v1507_v24 = vsel %vm827_vm14, %v826_v9, %v824_v3  ;;  %538 = vadd.xlane.f32.xlu2 %v380_v23  ;;  %v381_v23 = vmul.f32 %v285_v37, %v1388_v13  ;;  %v290_v9 = vld [vmem:[#allocation2 + $0x220] sm:$0xff] }
  0xb8   :  { %536 = vadd.xlane.f32.xlu1 %v379_v6  ;;  %v386_v11 = vmul.f32 %v290_v9, %v1287_v14 }
  0xb9   :  { %534 = vadd.xlane.f32.xlu0 %v378_v10  ;;  %v289_v10 = vld [vmem:[#allocation2 + $0x218] sm:$0xff] }
  0xba   :  { %v455_v29 = vpop.xlane.xlu2 %454  ;;  %v385_v37 = vmul.f32 %v289_v10, %v1298_v38 }
  0xbb   :  { %v453_v43 = vpop.xlane.xlu1 %452  ;;  %v836_v16 = vperm.slane %v455_v29, %v1427_v5 }
  0xbc   :  { %v834_v8 = vperm.slane %v453_v43, %v1414_v48  ;;  %v451_v12 = vpop.xlane.xlu0 %450  ;;  %v288_v43 = vld [vmem:[#allocation2 + $0x210] sm:$0xff] }
  0xbd   :  { %v832_v3 = vperm.slane %v451_v12, %v1420_v52 }
  0xbf   :  { %v833_v30 = vsel %vm775_vm1, %v832_v3, %v831_v17  ;;  %544 = vadd.xlane.f32.xlu2 %v383_v21  ;;  %v293_v3 = vld [vmem:[#allocation2 + $0x238] sm:$0xff] }
  0xc0   :  { %v835_v6 = vsel %vm779_vm2, %v834_v8, %v833_v30  ;;  %542 = vadd.xlane.f32.xlu1 %v382_v20  ;;  %v384_v8 = vmul.f32 %v288_v43, %v1289_v19  ;;  %v389_v9 = vmul.f32 %v293_v3, %v1307_v60 }
  0xc1   :  { %540 = vadd.xlane.f32.xlu0 %v381_v23  ;;  %v837_v42 = vsel %vm783_vm3, %v836_v16, %v835_v6  ;;  %v292_v23 = vld [vmem:[#allocation2 + $0x230] sm:$0xff]  ;;  %v291_v6 = vld [vmem:[#allocation2 + $0x228] sm:$0xff] }
  0xc2   :  { %v461_v51 = vpop.xlane.xlu2 %460  ;;  %v388_v19 = vmul.f32 %v292_v23, %v1309_v63 }
  0xc3   :  { %v459_v25 = vpop.xlane.xlu1 %458  ;;  %v842_v21 = vperm.slane %v461_v51, %v1440_v39 }
  0xc4   :  { %v840_v29 = vperm.slane %v459_v25, %v1447_v46  ;;  %v457_v12 = vpop.xlane.xlu0 %456  ;;  %v387_v25 = vmul.f32 %v291_v6, %v1296_v34 }
  0xc5   :  { %v838_v17 = vperm.slane %v457_v12, %v1423_v61  ;;  %v296_v12 = vld [vmem:[#allocation2 + $0x250] sm:$0xff] }
  0xc7   :  { %v839_v20 = vsel %vm787_vm4, %v838_v17, %v837_v42  ;;  %550 = vadd.xlane.f32.xlu2 %v386_v11  ;;  %v294_v17 = vld [vmem:[#allocation2 + $0x240] sm:$0xff] }
  0xc8   :  { %v841_v16 = vsel %vm791_vm5, %v840_v29, %v839_v20  ;;  %548 = vadd.xlane.f32.xlu1 %v385_v37  ;;  %v295_v37 = vld [vmem:[#allocation2 + $0x248] sm:$0xff]  ;;  %v390_v23 = vmul.f32 %v294_v17, %v1305_v57 }
  0xc9   :  { %546 = vadd.xlane.f32.xlu0 %v384_v8  ;;  %v843_v14 = vsel %vm795_vm6, %v842_v21, %v841_v16  ;;  %v392_v8 = vmul.f32 %v296_v12, %v1316_v18  ;;  %v391_v34 = vmul.f32 %v295_v37, %v1318_v22  ;;  %v301_v37 = vld [vmem:[#allocation2 + $0x278] sm:$0xff] }
  0xca   :  { %v467_v30 = vpop.xlane.xlu2 %466 }
  0xcb   :  { %v465_v38 = vpop.xlane.xlu1 %464  ;;  %v848_v42 = vperm.slane %v467_v30, %v1460_v33 }
  0xcc   :  { %v846_v10 = vperm.slane %v465_v38, %v1467_v50  ;;  %v463_v51 = vpop.xlane.xlu0 %462  ;;  %v299_v38 = vld [vmem:[#allocation2 + $0x268] sm:$0xff] }
  0xcd   :  { %v844_v43 = vperm.slane %v463_v51, %v1444_v36  ;;  %v297_v51 = vld [vmem:[#allocation2 + $0x258] sm:$0xff] }
  0xcf   :  { %v845_v11 = vsel %vm799_vm7, %v844_v43, %v843_v14  ;;  %556 = vadd.xlane.f32.xlu2 %v389_v9  ;;  %v298_v9 = vld [vmem:[#allocation2 + $0x260] sm:$0xff] }
  0xd0   :  { %v847_v29 = vsel %vm803_vm8, %v846_v10, %v845_v11  ;;  %554 = vadd.xlane.f32.xlu1 %v388_v19  ;;  %v395_v19 = vmul.f32 %v299_v38, %v1325_v44  ;;  %v394_v57 = vmul.f32 %v298_v9, %v1327_v47  ;;  %v393_v11 = vmul.f32 %v297_v51, %v1314_v15 }
  0xd1   :  { %552 = vadd.xlane.f32.xlu0 %v387_v25  ;;  %v849_v60 = vsel %vm807_vm9, %v848_v42, %v847_v29 }
  0xd2   :  { %v473_v21 = vpop.xlane.xlu2 %472 }
  0xd3   :  { %v471_v63 = vpop.xlane.xlu1 %470  ;;  %v854_v3 = vperm.slane %v473_v21, %v1478_v26  ;;  %v300_v21 = vld [vmem:[#allocation2 + $0x270] sm:$0xff] }
  0xd4   :  { %v852_v20 = vperm.slane %v471_v63, %v1485_v2  ;;  %v469_v16 = vpop.xlane.xlu0 %468 }
  0xd5   :  { %v850_v14 = vperm.slane %v469_v16, %v1463_v41 }
  0xd7   :  { %v851_v30 = vsel %vm811_vm10, %v850_v14, %v849_v60  ;;  %562 = vadd.xlane.f32.xlu2 %v392_v8  ;;  %v302_v60 = vld [vmem:[#allocation2 + $0x280] sm:$0xff] }
  0xd8   :  { %v853_v6 = vsel %vm815_vm11, %v852_v20, %v851_v30  ;;  %560 = vadd.xlane.f32.xlu1 %v391_v34  ;;  %v398_v47 = vmul.f32 %v302_v60, %v1334_v4  ;;  %v397_v20 = vmul.f32 %v301_v37, %v1336_v7  ;;  %v305_v30 = vld [vmem:[#allocation2 + $0x298] sm:$0xff]  ;;  %v306_v60 = vld [vmem:[#allocation2 + $0x2a0] sm:$0xff] }
  0xd9   :  { %558 = vadd.xlane.f32.xlu0 %v390_v23  ;;  %v855_v18 = vsel %vm819_vm12, %v854_v3, %v853_v6  ;;  %v396_v3 = vmul.f32 %v300_v21, %v1323_v40  ;;  %v304_v6 = vld [vmem:[#allocation2 + $0x290] sm:$0xff]  ;;  %v401_v9 = vmul.f32 %v305_v30, %v1343_v31 }
  0xda   :  { %v479_v10 = vpop.xlane.xlu2 %478  ;;  %v400_v40 = vmul.f32 %v304_v6, %v1345_v35 }
  0xdb   :  { %v477_v22 = vpop.xlane.xlu1 %476  ;;  %v860_v17 = vperm.slane %v479_v10, %v1411_v45 }
  0xdc   :  { %v858_v42 = vperm.slane %v477_v22, %v1497_v58  ;;  %v475_v43 = vpop.xlane.xlu0 %474 }
  0xdd   :  { %v856_v25 = vperm.slane %v475_v43, %v1481_v54 }
  0xdf   :  { %v857_v29 = vsel %vm823_vm13, %v856_v25, %v855_v18  ;;  %568 = vadd.xlane.f32.xlu2 %v395_v19  ;;  %v303_v18 = vld [vmem:[#allocation2 + $0x288] sm:$0xff]  ;;  %v308_v25 = vld [vmem:[#allocation2 + $0x2b0] sm:$0xff] }
  0xe0   :  { %v1552_v12 = vsel %vm827_vm14, %v858_v42, %v857_v29  ;;  %566 = vadd.xlane.f32.xlu1 %v394_v57  ;;  %v399_v42 = vmul.f32 %v303_v18, %v1332_v1  ;;  %v404_v37 = vmul.f32 %v308_v25, %v1352_v59  ;;  %v1813_v25 = vld [vmem:[#allocation13_spill] sm:$0xff] }
  0xe1   :  { %564 = vadd.xlane.f32.xlu0 %v393_v11  ;;  %v307_v11 = vld [vmem:[#allocation2 + $0x2a8] sm:$0xff] }
  0xe2   :  { %v485_v44 = vpop.xlane.xlu2 %484  ;;  %v403_v1 = vmul.f32 %v307_v11, %v1354_v0 }
  0xe3   :  { %v483_v63 = vpop.xlane.xlu1 %482  ;;  %v865_v16 = vperm.slane %v485_v44, %v1414_v48 }
  0xe4   :  { %v863_v8 = vperm.slane %v483_v63, %v1420_v52  ;;  %v481_v15 = vpop.xlane.xlu0 %480 }
  0xe5   :  { %v861_v34 = vperm.slane %v481_v15, %v1417_v49 }
  0xe7   :  { %v862_v14 = vsel %vm771_vm0, %v861_v34, %v860_v17  ;;  %574 = vadd.xlane.f32.xlu2 %v398_v47  ;;  %v402_v47 = vmul.f32 %v306_v60, %v1341_v28  ;;  %v317_v60 = vld [vmem:[#allocation2 + $0x2f8] sm:$0xff] }
  0xe8   :  { %v864_v23 = vsel %vm775_vm1, %v863_v8, %v862_v14  ;;  %572 = vadd.xlane.f32.xlu1 %v397_v20  ;;  %v311_v20 = vld [vmem:[#allocation2 + $0x2c8] sm:$0xff] }
  0xe9   :  { %570 = vadd.xlane.f32.xlu0 %v396_v3  ;;  %v866_v4 = vsel %vm779_vm2, %v865_v16, %v864_v23  ;;  %v310_v16 = vld [vmem:[#allocation2 + $0x2c0] sm:$0xff]  ;;  %v309_v3 = vld [vmem:[#allocation2 + $0x2b8] sm:$0xff]  ;;  %v407_v14 = vmul.f32 %v311_v20, %v1363_v27 }
  0xea   :  { %v491_v38 = vpop.xlane.xlu2 %490  ;;  %v406_v28 = vmul.f32 %v310_v16, %v1366_v32 }
  0xeb   :  { %v489_v7 = vpop.xlane.xlu1 %488  ;;  %v871_v22 = vperm.slane %v491_v38, %v1447_v46  ;;  %v405_v38 = vmul.f32 %v309_v3, %v1350_v55 }
  0xec   :  { %v869_v10 = vperm.slane %v489_v7, %v1423_v61  ;;  %v487_v51 = vpop.xlane.xlu0 %486 }
  0xed   :  { %v867_v19 = vperm.slane %v487_v51, %v1427_v5 }
  0xef   :  { %v868_v43 = vsel %vm783_vm3, %v867_v19, %v866_v4  ;;  %580 = vadd.xlane.f32.xlu2 %v401_v9  ;;  %v314_v9 = vld [vmem:[#allocation2 + $0x2e0] sm:$0xff] }
  0xf0   :  { %v870_v57 = vsel %vm787_vm4, %v869_v10, %v868_v43  ;;  %578 = vadd.xlane.f32.xlu1 %v400_v40  ;;  %v313_v10 = vld [vmem:[#allocation2 + $0x2d8] sm:$0xff]  ;;  %v312_v40 = vld [vmem:[#allocation2 + $0x2d0] sm:$0xff] }
  0xf1   :  { %576 = vadd.xlane.f32.xlu0 %v399_v42  ;;  %v872_v31 = vsel %vm791_vm5, %v871_v22, %v870_v57  ;;  %v410_v22 = vmul.f32 %v314_v9, %v1375_v56  ;;  %v409_v55 = vmul.f32 %v313_v10, %v1378_v62  ;;  %v315_v62 = vld [vmem:[#allocation2 + $0x2e8] sm:$0xff] }
  0xf2   :  { %v497_v29 = vpop.xlane.xlu2 %496 }
  0xf3   :  { %v495_v35 = vpop.xlane.xlu1 %494  ;;  %v877_v17 = vperm.slane %v497_v29, %v1467_v50 }
  0xf4   :  { %v875_v44 = vperm.slane %v495_v35, %v1444_v36  ;;  %v493_v21 = vpop.xlane.xlu0 %492  ;;  %v316_v35 = vld [vmem:[#allocation2 + $0x2f0] sm:$0xff] }
  0xf5   :  { %v873_v63 = vperm.slane %v493_v21, %v1440_v39 }
  0xf7   :  { %v874_v8 = vsel %vm795_vm6, %v873_v63, %v872_v31  ;;  %586 = vadd.xlane.f32.xlu2 %v404_v37  ;;  %v408_v31 = vmul.f32 %v312_v40, %v1813_v25 }
  0xf8   :  { %v876_v15 = vsel %vm799_vm7, %v875_v44, %v874_v8  ;;  %584 = vadd.xlane.f32.xlu1 %v403_v1  ;;  %v413_v1 = vmul.f32 %v317_v60, %v1388_v13  ;;  %v1814_v8 = vld [vmem:[#allocation17_spill] sm:$0xff] }
  0xf9   :  { %582 = vadd.xlane.f32.xlu0 %v402_v47  ;;  %v878_v59 = vsel %vm803_vm8, %v877_v17, %v876_v15  ;;  %v412_v15 = vmul.f32 %v316_v35, %v1814_v8 }
  0xfa   :  { %v503_v34 = vpop.xlane.xlu2 %502 }
  0xfb   :  { %v501_v0 = vpop.xlane.xlu1 %500  ;;  %v883_v4 = vperm.slane %v503_v34, %v1485_v2 }
  0xfc   :  { %v881_v23 = vperm.slane %v501_v0, %v1463_v41  ;;  %v499_v30 = vpop.xlane.xlu0 %498 }
  0xfd   :  { %v879_v6 = vperm.slane %v499_v30, %v1460_v33 }
  0xff   :  { %v880_v18 = vsel %vm807_vm9, %v879_v6, %v878_v59  ;;  %592 = vadd.xlane.f32.xlu2 %v407_v14  ;;  %v411_v59 = vmul.f32 %v315_v62, %v1373_v53  ;;  %v1124_v6 = vld [vmem:[#allocation7] sm:$0xff]  ;;  %v1130_v62 = vld [vmem:[#allocation7 + $0x30] sm:$0xff] }
 0x100   :  { %v882_v7 = vsel %vm811_vm10, %v881_v23, %v880_v18  ;;  %590 = vadd.xlane.f32.xlu1 %v406_v28  ;;  %v1122_v28 = vld [vmem:[#allocation7 + $0x10] sm:$0xff] }
 0x101   :  { %588 = vadd.xlane.f32.xlu0 %v405_v38  ;;  %v884_v27 = vsel %vm815_vm11, %v883_v4, %v882_v7  ;;  %v1123_v4 = vld [vmem:[#allocation7 + $0x8] sm:$0xff] }
 0x102   :  { %v509_v51 = vpop.xlane.xlu2 %508 }
 0x103   :  { %v507_v32 = vpop.xlane.xlu1 %506  ;;  %v889_v43 = vperm.slane %v509_v51, %v1497_v58 }
 0x104   :  { %v887_v19 = vperm.slane %v507_v32, %v1481_v54  ;;  %v505_v42 = vpop.xlane.xlu0 %504  ;;  %v1125_v32 = vld [vmem:[#allocation7 + $0x28] sm:$0xff] }
 0x105   :  { %v885_v57 = vperm.slane %v505_v42, %v1478_v26  ;;  %v1127_v42 = vld [vmem:[#allocation7 + $0x18] sm:$0xff] }
 0x107   :  { %v886_v11 = vsel %vm819_vm12, %v885_v57, %v884_v27  ;;  %598 = vadd.xlane.f32.xlu2 %v410_v22 }
 0x108   :  { %v888_v29 = vsel %vm823_vm13, %v887_v19, %v886_v11  ;;  %596 = vadd.xlane.f32.xlu1 %v409_v55  ;;  %v1126_v19 = vld [vmem:[#allocation7 + $0x20] sm:$0xff] }
 0x109   :  { %v890_v56 = vsel %vm827_vm14, %v889_v43, %v888_v29  ;;  %594 = vadd.xlane.f32.xlu0 %v408_v31 }
 0x10a   :  { %v515_v37 = vpop.xlane.xlu2 %514  ;;  %v1602_v44 = vsel %vm984_vm15, %v890_v56, %v1507_v24  ;;  %v1128_v56 = vld [vmem:[#allocation7 + $0x40] sm:$0xff] }
 0x10b   :  { %v513_v21 = vpop.xlane.xlu1 %512  ;;  %v894_v63 = vperm.slane %v515_v37, %v1420_v52  ;;  %v1129_v37 = vld [vmem:[#allocation7 + $0x38] sm:$0xff] }
 0x10c   :  { %v892_v17 = vperm.slane %v513_v21, %v1417_v49  ;;  %v511_v47 = vpop.xlane.xlu0 %510 }
 0x10d   :  { %v891_v20 = vperm.slane %v511_v47, %v1411_v45 }
 0x10f   :  { %v893_v16 = vsel %vm771_vm0, %v892_v17, %v891_v20  ;;  %604 = vadd.xlane.f32.xlu2 %v413_v1 }
 0x110   :  { %602 = vadd.xlane.f32.xlu1 %v412_v15  ;;  %v895_v24 = vsel %vm775_vm1, %v894_v63, %v893_v16 }
 0x111   :  { %600 = vadd.xlane.f32.xlu0 %v411_v59  ;;  %v1131_v59 = vld [vmem:[#allocation7 + $0x58] sm:$0xff] }
 0x112   :  { %v521_v34 = vpop.xlane.xlu2 %520 }
 0x113   :  { %v519_v13 = vpop.xlane.xlu1 %518  ;;  %v900_v14 = vperm.slane %v521_v34, %v1423_v61  ;;  %v1133_v34 = vld [vmem:[#allocation7 + $0x48] sm:$0xff] }
 0x114   :  { %v898_v3 = vperm.slane %v519_v13, %v1427_v5  ;;  %v517_v0 = vpop.xlane.xlu0 %516 }
 0x115   :  { %v896_v23 = vperm.slane %v517_v0, %v1414_v48 }
 0x117   :  { %v897_v30 = vsel %vm779_vm2, %v896_v23, %v895_v24  ;;  %610 = vadd.xlane.f32.xlu2 %v1122_v28  ;;  %v1132_v24 = vld [vmem:[#allocation7 + $0x50] sm:$0xff] }
 0x118   :  { %v899_v53 = vsel %vm783_vm3, %v898_v3, %v897_v30  ;;  %608 = vadd.xlane.f32.xlu1 %v1123_v4 }
 0x119   :  { %606 = vadd.xlane.f32.xlu0 %v1124_v6  ;;  %v901_v38 = vsel %vm787_vm4, %v900_v14, %v899_v53  ;;  %v1134_v6 = vld [vmem:[#allocation7 + $0x90] sm:$0xff] }
 0x11a   :  { %v527_v18 = vpop.xlane.xlu2 %526 }
 0x11b   :  { %v525_v7 = vpop.xlane.xlu1 %524  ;;  %v906_v10 = vperm.slane %v527_v18, %v1444_v36  ;;  %v1135_v18 = vld [vmem:[#allocation7 + $0x88] sm:$0xff] }
 0x11c   :  { %v904_v9 = vperm.slane %v525_v7, %v1440_v39  ;;  %v523_v27 = vpop.xlane.xlu0 %522  ;;  %v1136_v7 = vld [vmem:[#allocation7 + $0x80] sm:$0xff] }
 0x11d   :  { %v902_v51 = vperm.slane %v523_v27, %v1447_v46 }
 0x11f   :  { %v903_v40 = vsel %vm791_vm5, %v902_v51, %v901_v38  ;;  %616 = vadd.xlane.f32.xlu2 %v1125_v32 }
 0x120   :  { %v905_v22 = vsel %vm795_vm6, %v904_v9, %v903_v40  ;;  %614 = vadd.xlane.f32.xlu1 %v1126_v19  ;;  %v1137_v19 = vld [vmem:[#allocation7 + $0xa8] sm:$0xff] }
 0x121   :  { %612 = vadd.xlane.f32.xlu0 %v1127_v42  ;;  %v907_v55 = vsel %vm799_vm7, %v906_v10, %v905_v22  ;;  %v1138_v42 = vld [vmem:[#allocation7 + $0xa0] sm:$0xff] }
 0x122   :  { %v533_v43 = vpop.xlane.xlu2 %532 }
 0x123   :  { %v531_v57 = vpop.xlane.xlu1 %530  ;;  %v912_v11 = vperm.slane %v533_v43, %v1463_v41 }
 0x124   :  { %v910_v25 = vperm.slane %v531_v57, %v1460_v33  ;;  %v529_v31 = vpop.xlane.xlu0 %528 }
 0x125   :  { %v908_v29 = vperm.slane %v529_v31, %v1467_v50 }
 0x127   :  { %v909_v60 = vsel %vm803_vm8, %v908_v29, %v907_v55  ;;  %622 = vadd.xlane.f32.xlu2 %v1128_v56  ;;  %v1139_v55 = vld [vmem:[#allocation7 + $0x98] sm:$0xff] }
 0x128   :  { %v911_v35 = vsel %vm807_vm9, %v910_v25, %v909_v60  ;;  %620 = vadd.xlane.f32.xlu1 %v1129_v37 }
 0x129   :  { %618 = vadd.xlane.f32.xlu0 %v1130_v62  ;;  %v913_v21 = vsel %vm811_vm10, %v912_v11, %v911_v35  ;;  %v1815_v35 = vld [vmem:[#allocation12_spill] sm:$0xff]  ;;  %v1140_v62 = vld [vmem:[#allocation7 + $0xb8] sm:$0xff] }
 0x12a   :  { %v539_v1 = vpop.xlane.xlu2 %538 }
 0x12b   :  { %v537_v17 = vpop.xlane.xlu1 %536  ;;  %v918_v8 = vperm.slane %v539_v1, %v1481_v54 }
 0x12c   :  { %v916_v63 = vperm.slane %v537_v17, %v1478_v26  ;;  %v535_v47 = vpop.xlane.xlu0 %534 }
 0x12d   :  { %v914_v15 = vperm.slane %v535_v47, %v1485_v2 }
 0x12f   :  { %v915_v20 = vsel %vm815_vm11, %v914_v15, %v913_v21  ;;  %628 = vadd.xlane.f32.xlu2 %v1131_v59  ;;  %v1141_v21 = vld [vmem:[#allocation7 + $0xb0] sm:$0xff] }
 0x130   :  { %v917_v16 = vsel %vm819_vm12, %v916_v63, %v915_v20  ;;  %626 = vadd.xlane.f32.xlu1 %v1132_v24 }
 0x131   :  { %624 = vadd.xlane.f32.xlu0 %v1133_v34  ;;  %v919_v13 = vsel %vm823_vm13, %v918_v8, %v917_v16  ;;  %v1816_v16 = vld [vmem:[#allocation14_spill] sm:$0xff]  ;;  %v1142_v34 = vld [vmem:[#allocation7 + $0xd0] sm:$0xff] }
 0x132   :  { %v545_v3 = vpop.xlane.xlu2 %544 }
 0x133   :  { %v543_v0 = vpop.xlane.xlu1 %542  ;;  %v923_v14 = vperm.slane %v545_v3, %v1417_v49 }
 0x134   :  { %v922_v23 = vperm.slane %v543_v0, %v1411_v45  ;;  %v541_v30 = vpop.xlane.xlu0 %540 }
 0x135   :  { %v920_v28 = vperm.slane %v541_v30, %v1497_v58 }
 0x136   :  { %v924_v53 = vsel %vm771_vm0, %v923_v14, %v922_v23 }
 0x137   :  { %v921_v4 = vsel %vm827_vm14, %v920_v28, %v919_v13  ;;  %642 = vadd.xlane.f32.xlu2 %v1134_v6  ;;  %v1143_v13 = vld [vmem:[#allocation7 + $0xc8] sm:$0xff]  ;;  %v1144_v6 = vld [vmem:[#allocation7 + $0x60] sm:$0xff] }
 0x138   :  { %v1643_v38 = vsel %vm984_vm15, %v921_v4, %v1552_v12  ;;  %640 = vadd.xlane.f32.xlu1 %v1135_v18  ;;  %vm986_vm15 = vcmask 1042434  }
 0x139   :  { %638 = vadd.xlane.f32.xlu0 %v1136_v7  ;;  %v1145_v7 = vld [vmem:[#allocation7 + $0xe8] sm:$0xff] }
 0x13a   :  { %v551_v9 = vpop.xlane.xlu2 %550 }
 0x13b   :  { %v549_v27 = vpop.xlane.xlu1 %548  ;;  %v929_v40 = vperm.slane %v551_v9, %v1427_v5  ;;  %v1146_v9 = vld [vmem:[#allocation7 + $0xe0] sm:$0xff] }
 0x13c   :  { %v927_v10 = vperm.slane %v549_v27, %v1414_v48  ;;  %v547_v51 = vpop.xlane.xlu0 %546 }
 0x13d   :  { %v925_v32 = vperm.slane %v547_v51, %v1420_v52 }
 0x13f   :  { %v926_v22 = vsel %vm775_vm1, %v925_v32, %v924_v53  ;;  %648 = vadd.xlane.f32.xlu2 %v1137_v19 }
 0x140   :  { %v928_v12 = vsel %vm779_vm2, %v927_v10, %v926_v22  ;;  %646 = vadd.xlane.f32.xlu1 %v1138_v42 }
 0x141   :  { %644 = vadd.xlane.f32.xlu0 %v1139_v55  ;;  %v930_v43 = vsel %vm783_vm3, %v929_v40, %v928_v12  ;;  %v1817_v12 = vld [vmem:[#allocation15_spill] sm:$0xff]  ;;  %v1147_v55 = vld [vmem:[#allocation7 + $0x68] sm:$0xff] }
 0x142   :  { %v557_v57 = vpop.xlane.xlu2 %556 }
 0x143   :  { %v555_v25 = vpop.xlane.xlu1 %554  ;;  %v935_v29 = vperm.slane %v557_v57, %v1440_v39 }
 0x144   :  { %v933_v31 = vperm.slane %v555_v25, %v1447_v46  ;;  %v553_v11 = vpop.xlane.xlu0 %552 }
 0x145   :  { %v931_v60 = vperm.slane %v553_v11, %v1423_v61 }
 0x147   :  { %v932_v56 = vsel %vm787_vm4, %v931_v60, %v930_v43  ;;  %654 = vadd.xlane.f32.xlu2 %v1815_v35  ;;  %v1818_v43 = vld [vmem:[#allocation16_spill] sm:$0xff] }
 0x148   :  { %v934_v37 = vsel %vm791_vm5, %v933_v31, %v932_v56  ;;  %652 = vadd.xlane.f32.xlu1 %v1140_v62 }
 0x149   :  { %650 = vadd.xlane.f32.xlu0 %v1141_v21  ;;  %v936_v1 = vsel %vm795_vm6, %v935_v29, %v934_v37  ;;  %v1148_v21 = vld [vmem:[#allocation7 + $0x78] sm:$0xff] }
 0x14a   :  { %v563_v17 = vpop.xlane.xlu2 %562 }
 0x14b   :  { %v561_v63 = vpop.xlane.xlu1 %560  ;;  %v941_v15 = vperm.slane %v563_v17, %v1460_v33 }
 0x14c   :  { %v939_v47 = vperm.slane %v561_v63, %v1467_v50  ;;  %v559_v8 = vpop.xlane.xlu0 %558 }
 0x14d   :  { %v937_v20 = vperm.slane %v559_v8, %v1444_v36 }
 0x14f   :  { %v938_v59 = vsel %vm799_vm7, %v937_v20, %v936_v1  ;;  %660 = vadd.xlane.f32.xlu2 %v1816_v16  ;;  %v1149_v1 = vld [vmem:[#allocation7 + $0x70] sm:$0xff] }
 0x150   :  { %v940_v24 = vsel %vm803_vm8, %v939_v47, %v938_v59  ;;  %658 = vadd.xlane.f32.xlu1 %v1142_v34 }
 0x151   :  { %656 = vadd.xlane.f32.xlu0 %v1143_v13  ;;  %v942_v3 = vsel %vm807_vm9, %v941_v15, %v940_v24 }
 0x152   :  { %v569_v0 = vpop.xlane.xlu2 %568 }
 0x153   :  { %v567_v14 = vpop.xlane.xlu1 %566  ;;  %v947_v28 = vperm.slane %v569_v0, %v1478_v26 }
 0x154   :  { %v945_v23 = vperm.slane %v567_v14, %v1485_v2  ;;  %v565_v30 = vpop.xlane.xlu0 %564 }
 0x155   :  { %v943_v53 = vperm.slane %v565_v30, %v1463_v41 }
 0x157   :  { %v944_v4 = vsel %vm811_vm10, %v943_v53, %v942_v3  ;;  %630 = vadd.xlane.f32.xlu2 %v1144_v6 }
 0x158   :  { %v946_v18 = vsel %vm815_vm11, %v945_v23, %v944_v4  ;;  %664 = vadd.xlane.f32.xlu1 %v1145_v7 }
 0x159   :  { %662 = vadd.xlane.f32.xlu0 %v1146_v9  ;;  %v948_v27 = vsel %vm819_vm12, %v947_v28, %v946_v18 }
 0x15a   :  { %v575_v10 = vpop.xlane.xlu2 %574 }
 0x15b   :  { %v573_v51 = vpop.xlane.xlu1 %572  ;;  %v953_v31 = vperm.slane %v575_v10, %v1411_v45 }
 0x15c   :  { %v951_v40 = vperm.slane %v573_v51, %v1497_v58  ;;  %v571_v32 = vpop.xlane.xlu0 %570 }
 0x15d   :  { %v949_v22 = vperm.slane %v571_v32, %v1481_v54 }
 0x15f   :  { %v950_v19 = vsel %vm823_vm13, %v949_v22, %v948_v27  ;;  %668 = vadd.xlane.f32.xlu2 %v1817_v12 }
 0x160   :  { %v952_v42 = vsel %vm827_vm14, %v951_v40, %v950_v19  ;;  %632 = vadd.xlane.f32.xlu1 %v1147_v55 }
 0x161   :  { %666 = vadd.xlane.f32.xlu0 %v1818_v43  ;;  %v1679_v57 = vsel %vm986_vm15, %v952_v42, %v1602_v44 }
 0x162   :  { %v581_v25 = vpop.xlane.xlu2 %580 }
 0x163   :  { %v579_v11 = vpop.xlane.xlu1 %578  ;;  %v958_v56 = vperm.slane %v581_v25, %v1414_v48 }
 0x164   :  { %v956_v29 = vperm.slane %v579_v11, %v1420_v52  ;;  %v577_v60 = vpop.xlane.xlu0 %576 }
 0x165   :  { %v954_v35 = vperm.slane %v577_v60, %v1417_v49 }
 0x167   :  { %v955_v37 = vsel %vm771_vm0, %v954_v35, %v953_v31 }
 0x168   :  { %v957_v62 = vsel %vm775_vm1, %v956_v29, %v955_v37  ;;  %636 = vadd.xlane.f32.xlu1 %v1148_v21 }
 0x169   :  { %634 = vadd.xlane.f32.xlu0 %v1149_v1  ;;  %v959_v44 = vsel %vm779_vm2, %v958_v56, %v957_v62 }
 0x16a   :  { %v587_v17 = vpop.xlane.xlu2 %586 }
 0x16b   :  { %v585_v63 = vpop.xlane.xlu1 %584  ;;  %v964_v15 = vperm.slane %v587_v17, %v1447_v46 }
 0x16c   :  { %v962_v47 = vperm.slane %v585_v63, %v1423_v61  ;;  %v583_v8 = vpop.xlane.xlu0 %582 }
 0x16d   :  { %v960_v20 = vperm.slane %v583_v8, %v1427_v5 }
 0x16f   :  { %v961_v59 = vsel %vm783_vm3, %v960_v20, %v959_v44 }
 0x170   :  { %v963_v16 = vsel %vm787_vm4, %v962_v47, %v961_v59 }
 0x171   :  { %v965_v24 = vsel %vm791_vm5, %v964_v15, %v963_v16 }
 0x172   :  { %v593_v34 = vpop.xlane.xlu2 %592 }
 0x173   :  { %v591_v13 = vpop.xlane.xlu1 %590  ;;  %v970_v14 = vperm.slane %v593_v34, %v1467_v50 }
 0x174   :  { %v968_v3 = vperm.slane %v591_v13, %v1444_v36  ;;  %v589_v0 = vpop.xlane.xlu0 %588 }
 0x175   :  { %v966_v23 = vperm.slane %v589_v0, %v1440_v39 }
 0x177   :  { %v967_v30 = vsel %vm795_vm6, %v966_v23, %v965_v24 }
 0x178   :  { %v969_v28 = vsel %vm799_vm7, %v968_v3, %v967_v30 }
 0x179   :  { %v971_v53 = vsel %vm803_vm8, %v970_v14, %v969_v28 }
 0x17a   :  { %v599_v4 = vpop.xlane.xlu2 %598 }
 0x17b   :  { %v597_v6 = vpop.xlane.xlu1 %596  ;;  %v976_v9 = vperm.slane %v599_v4, %v1485_v2 }
 0x17c   :  { %v974_v18 = vperm.slane %v597_v6, %v1463_v41  ;;  %v595_v7 = vpop.xlane.xlu0 %594 }
 0x17d   :  { %v972_v27 = vperm.slane %v595_v7, %v1460_v33 }
 0x17f   :  { %v973_v10 = vsel %vm807_vm9, %v972_v27, %v971_v53 }
 0x180   :  { %v975_v51 = vsel %vm811_vm10, %v974_v18, %v973_v10 }
 0x181   :  { %v977_v40 = vsel %vm815_vm11, %v976_v9, %v975_v51 }
 0x182   :  { %v605_v32 = vpop.xlane.xlu2 %604 }
 0x183   :  { %v603_v22 = vpop.xlane.xlu1 %602  ;;  %v982_v42 = vperm.slane %v605_v32, %v1497_v58 }
 0x184   :  { %v980_v19 = vperm.slane %v603_v22, %v1481_v54  ;;  %v601_v12 = vpop.xlane.xlu0 %600 }
 0x185   :  { %v978_v55 = vperm.slane %v601_v12, %v1478_v26 }
 0x187   :  { %v979_v43 = vsel %vm819_vm12, %v978_v55, %v977_v40 }
 0x188   :  { %v981_v25 = vsel %vm823_vm13, %v980_v19, %v979_v43 }
 0x189   :  { %v983_v31 = vsel %vm827_vm14, %v982_v42, %v981_v25 }
 0x18a   :  { %v611_v11 = vpop.xlane.xlu2 %610  ;;  %v1714_v29 = vsel %vm986_vm15, %v983_v31, %v1643_v38 }
 0x18b   :  { %v609_v60 = vpop.xlane.xlu1 %608  ;;  %v1027_v10 = vperm.slane %v611_v11, %v1420_v52 }
 0x18c   :  { %v1025_v56 = vperm.slane %v609_v60, %v1417_v49  ;;  %v607_v35 = vpop.xlane.xlu0 %606 }
 0x18d   :  { %v1024_v37 = vperm.slane %v607_v35, %v1411_v45 }
 0x18f   :  { %v1026_v62 = vsel %vm771_vm0, %v1025_v56, %v1024_v37 }
 0x190   :  { %v1028_v55 = vsel %vm775_vm1, %v1027_v10, %v1026_v62 }
 0x192   :  { %v617_v21 = vpop.xlane.xlu2 %616 }
 0x193   :  { %v615_v1 = vpop.xlane.xlu1 %614 }
 0x194   :  { %v613_v44 = vpop.xlane.xlu0 %612  ;;  %v1031_v42 = vperm.slane %v615_v1, %v1427_v5 }
 0x195   :  { %v1029_v40 = vperm.slane %v613_v44, %v1414_v48 }
 0x197   :  { %v1030_v25 = vsel %vm779_vm2, %v1029_v40, %v1028_v55 }
 0x198   :  { %v1032_v60 = vsel %vm783_vm3, %v1031_v42, %v1030_v25 }
 0x19a   :  { %v1719_v17 = vpop.xlane.xlu2 %622 }
 0x19b   :  { %v621_v63 = vpop.xlane.xlu1 %620 }
 0x19c   :  { %v619_v47 = vpop.xlane.xlu0 %618  ;;  %v1037_v44 = vperm.slane %v621_v63, %v1440_v39 }
 0x19d   :  { %v1035_v56 = vperm.slane %v619_v47, %v1447_v46  ;;  %v1039_v47 = vperm.slane %v1719_v17, %v1444_v36 }
 0x1a2   :  { %v1721_v8 = vpop.xlane.xlu2 %628 }
 0x1a3   :  { %v1723_v15 = vpop.xlane.xlu1 %626 }
 0x1a4   :  { %v1725_v38 = vpop.xlane.xlu0 %624 }
 0x1aa   :  { %v643_v20 = vpop.xlane.xlu2 %642 }
 0x1ab   :  { %v641_v59 = vpop.xlane.xlu1 %640  ;;  %v1058_v14 = vperm.slane %v643_v20, %v1420_v52 }
 0x1ac   :  { %v639_v16 = vpop.xlane.xlu0 %638  ;;  %v1056_v3 = vperm.slane %v641_v59, %v1417_v49 }
 0x1ad   :  { %v1055_v0 = vperm.slane %v639_v16, %v1411_v45 }
 0x1af   :  { %v1057_v23 = vsel %vm771_vm0, %v1056_v3, %v1055_v0  ;;  %vm1088_vm0 = vcmask 1042432  }
 0x1b0   :  { %v1059_v18 = vsel %vm775_vm1, %v1058_v14, %v1057_v23  ;;  %v1043_v14 = vperm.slane %v1723_v15, %v1460_v33  ;;  %vm1094_vm1 = vcmask 1043456  }
 0x1b2   :  { %v649_v24 = vpop.xlane.xlu2 %648 }
 0x1b3   :  { %v647_v34 = vpop.xlane.xlu1 %646  ;;  %v1064_v9 = vperm.slane %v649_v24, %v1423_v61  ;;  %v1041_v24 = vperm.slane %v1725_v38, %v1467_v50 }
 0x1b4   :  { %v645_v13 = vpop.xlane.xlu0 %644  ;;  %v1062_v6 = vperm.slane %v647_v34, %v1427_v5 }
 0x1b5   :  { %v1060_v30 = vperm.slane %v645_v13, %v1414_v48  ;;  %v1033_v48 = vperm.slane %v617_v21, %v1423_v61 }
 0x1b7   :  { %v1061_v7 = vsel %vm779_vm2, %v1060_v30, %v1059_v18  ;;  %v1034_v20 = vsel %vm787_vm4, %v1033_v48, %v1032_v60 }
 0x1b8   :  { %v1063_v49 = vsel %vm783_vm3, %v1062_v6, %v1061_v7  ;;  %v1036_v61 = vsel %vm791_vm5, %v1035_v56, %v1034_v20 }
 0x1b9   :  { %v1065_v22 = vsel %vm787_vm4, %v1064_v9, %v1063_v49  ;;  %v1038_v16 = vsel %vm795_vm6, %v1037_v44, %v1036_v61 }
 0x1ba   :  { %v655_v28 = vpop.xlane.xlu2 %654  ;;  %v1040_v23 = vsel %vm799_vm7, %v1039_v47, %v1038_v16 }
 0x1bb   :  { %v653_v53 = vpop.xlane.xlu1 %652  ;;  %v1070_v43 = vperm.slane %v655_v28, %v1444_v36  ;;  %v1042_v17 = vsel %vm803_vm8, %v1041_v24, %v1040_v23  ;;  %v1045_v28 = vperm.slane %v1721_v8, %v1463_v41 }
 0x1bc   :  { %v651_v4 = vpop.xlane.xlu0 %650  ;;  %v1068_v32 = vperm.slane %v653_v53, %v1440_v39  ;;  %v1044_v53 = vsel %vm807_vm9, %v1043_v14, %v1042_v17 }
 0x1bd   :  { %v1066_v45 = vperm.slane %v651_v4, %v1447_v46  ;;  %v1046_v18 = vsel %vm811_vm10, %v1045_v28, %v1044_v53 }
 0x1bf   :  { %v1067_v12 = vsel %vm791_vm5, %v1066_v45, %v1065_v22 }
 0x1c0   :  { %v1069_v52 = vsel %vm795_vm6, %v1068_v32, %v1067_v12 }
 0x1c1   :  { %v1071_v5 = vsel %vm799_vm7, %v1070_v43, %v1069_v52 }
 0x1c2   :  { %v661_v27 = vpop.xlane.xlu2 %660 }
 0x1c3   :  { %v659_v51 = vpop.xlane.xlu1 %658  ;;  %v1076_v59 = vperm.slane %v661_v27, %v1463_v41 }
 0x1c4   :  { %v657_v19 = vpop.xlane.xlu0 %656  ;;  %v1074_v35 = vperm.slane %v659_v51, %v1460_v33 }
 0x1c5   :  { %v1072_v31 = vperm.slane %v657_v19, %v1467_v50 }
 0x1c7   :  { %v1073_v62 = vsel %vm803_vm8, %v1072_v31, %v1071_v5 }
 0x1c8   :  { %v1075_v21 = vsel %vm807_vm9, %v1074_v35, %v1073_v62 }
 0x1c9   :  { %v1077_v63 = vsel %vm811_vm10, %v1076_v59, %v1075_v21 }
 0x1ca   :  { %v631_v11 = vpop.xlane.xlu2 %630 }
 0x1cb   :  { %v665_v37 = vpop.xlane.xlu1 %664  ;;  %v1047_v4 = vperm.slane %v631_v11, %v1485_v2 }
 0x1cc   :  { %v663_v1 = vpop.xlane.xlu0 %662  ;;  %v1080_v39 = vperm.slane %v665_v37, %v1478_v26 }
 0x1cd   :  { %v1078_v46 = vperm.slane %v663_v1, %v1485_v2  ;;  %v1048_v49 = vsel %vm815_vm11, %v1047_v4, %v1046_v18 }
 0x1cf   :  { %v1079_v34 = vsel %vm815_vm11, %v1078_v46, %v1077_v63 }
 0x1d0   :  { %v1081_v50 = vsel %vm819_vm12, %v1080_v39, %v1079_v34 }
 0x1d2   :  { %v669_v3 = vpop.xlane.xlu2 %668 }
 0x1d3   :  { %v633_v13 = vpop.xlane.xlu1 %632  ;;  %v1084_v38 = vperm.slane %v669_v3, %v1497_v58 }
 0x1d4   :  { %v667_v0 = vpop.xlane.xlu0 %666  ;;  %v1049_v33 = vperm.slane %v633_v13, %v1478_v26 }
 0x1d5   :  { %v1082_v36 = vperm.slane %v667_v0, %v1481_v54 }
 0x1d6   :  { %v1050_v2 = vsel %vm819_vm12, %v1049_v33, %v1048_v49 }
 0x1d7   :  { %v1083_v30 = vsel %vm823_vm13, %v1082_v36, %v1081_v50 }
 0x1d8   :  { %v1085_v15 = vsel %vm827_vm14, %v1084_v38, %v1083_v30 }
 0x1d9   :  { %v1090_v41 = vsel %vm1088_vm0, %v1714_v29, %v1085_v15 }
 0x1da   :  { %v1093_v45 = vrot.slane %v1090_v41, 4 }
 0x1db   :  { %v637_v6 = vpop.xlane.xlu1 %636 }
 0x1dc   :  { %v635_v7 = vpop.xlane.xlu0 %634  ;;  %v1053_v9 = vperm.slane %v637_v6, %v1497_v58 }
 0x1dd   :  { %v1051_v8 = vperm.slane %v635_v7, %v1481_v54 }
 0x1df   :  { %v1052_v26 = vsel %vm823_vm13, %v1051_v8, %v1050_v2 }
 0x1e0   :  { %v1054_v58 = vsel %vm827_vm14, %v1053_v9, %v1052_v26 }
 0x1e1   :  { %v1089_v27 = vsel %vm1088_vm0, %v1679_v57, %v1054_v58 }
 0x1e2   :  { %v1095_v54 = vsel %vm1094_vm1, %v1089_v27, %v1093_v45 }
 0x1e3   :  { %1097 = vst [vmem:[#allocation8] sm:$0xff] %v1095_v54 }
 0x1e4   :  { %1108 = dma.vmem_to_hbm [thread:$0]  %s1104_s2, 128, %s1106_s30, [#allocation4]  }
 0x1e5   :  { %1250 = dma.done.wait [#allocation4], 128  }
 0x1e6   :  { %1251 = vsyncadd [#allocation4], 4294967168 }
 0x1e7   :  { %1113 = vsyncpa [#allocation3], 1 }
 0x1e8   :  { %1114 = vsyncpa [#allocation6], 1 }
 0x1e9   :  { %1115 = vsyncpa [#allocation4], 1 }

</bundles_post_ra>
